<compile_context>
chip_gen: v7x
topology: tpu7x:2x2x1
jax: 0.10.0
libtpu: 0.0.40
codegen_flags: <defaults>
</compile_context>

<pallas_src>
import jax
import jax.numpy as jnp
from jax.experimental import pallas as pl
from jax.experimental.pallas import tpu as pltpu


def _round_up(x: int, m: int) -> int:
    return ((x + m - 1) // m) * m


def _cdiv(a: int, b: int) -> int:
    return -(-a // b)


def _onehot_kernel(idx_ref, out_ref):
    """Generic one-hot kernel.

    idx_ref: (tile_m, R) narrow-int block.  Column r already holds
             class_id + r*C for valid entries and a negative sentinel for
             invalid / padded entries (offsets pre-folded in the wrapper), so
             each column costs exactly one wide compare + one wide OR (VPU).
    out_ref: (tile_m, PW) block in the caller-requested dtype, PW lane-dense.
    """
    tm, pw = out_ref.shape
    r_cols = idx_ref.shape[1]
    lane = jax.lax.broadcasted_iota(jnp.int32, (tm, pw), 1)
    idx = idx_ref[...].astype(jnp.int32)              # narrow -> int32 once
    onehot = lane == idx[:, 0:1]
    for r in range(1, r_cols):                        # fully unrolled, R <= 64
        onehot = onehot | (lane == idx[:, r:r + 1])
    out_ref[...] = onehot.astype(out_ref.dtype)       # emit final dtype in-kernel


def indices_to_onehot_pallas(indices, num_classes: int, dtype=jnp.bool_):
    """One-hot encode `indices` -> indices.shape + (num_classes,)."""
    indices = jnp.asarray(indices)
    orig_shape = indices.shape
    C = int(num_classes)
    # TODO(synk): dtype=None in torch maps to one_hot's int64; use int32 on TPU.
    out_dtype = jnp.dtype(jnp.int32) if dtype is None else jnp.dtype(dtype)

    flat = indices.reshape(-1).astype(jnp.int32)
    n = int(flat.shape[0])
    if n == 0:
        return jnp.zeros((*orig_shape, C), dtype=out_dtype)

    # ---- packing so stored output rows are lane-dense (last dim % 128 == 0) ----
    if C % 128 == 0:
        R, PW = 1, C                       # already lane-aligned
    elif 128 % C == 0 and C >= 2:
        R, PW = 128 // C, 128              # pack R index rows per 128-lane output row
    else:
        R, PW = 1, _round_up(C, 128)       # pad lanes in-kernel, slice [:C] in wrapper
        # TODO(synk): lcm(C,128) packing would drop the wrapper lane-slice, but
        # costs 2*lcm(C,128)/C wide VALU ops per output element -- not worth it.

    out_itemsize = out_dtype.itemsize
    idx_dtype = jnp.int8 if R > 1 else jnp.int32      # packed path: C<=64, fits int8
    idx_itemsize = jnp.dtype(idx_dtype).itemsize
    # Sentinel chosen so sentinel + r*C < 0 for every r < R: can never hit a lane.
    sentinel = -128 if R > 1 else -1

    # ---- tile sizing: ~3 MiB of (out block + idx block) per grid step.
    # Idx block's lane dim pads to 128 in VMEM, hence 128*idx_itemsize per row.
    # Double-buffered working set stays <= ~6 MiB: fits every chip's VMEM with
    # large headroom under the explicit 32 MiB limit below (v5e default is 16). ----
    bytes_per_row = PW * out_itemsize + 128 * idx_itemsize
    tile_m = (3 * 1024 * 1024) // max(bytes_per_row, 1)
    tile_m = max(32, min(16384, (tile_m // 32) * 32))
    m_needed = _cdiv(n, R)
    if m_needed > tile_m:
        m_pad = _round_up(m_needed, tile_m)
    elif m_needed >= 1024:
        # Split mid-size inputs into 2 blocks so both v7x TensorCores get work
        # (harmless on single-core v5e/v6e).
        tile_m = _round_up(_cdiv(m_needed, 2), 32)
        m_pad = 2 * tile_m
    else:
        tile_m = m_needed                  # single block == full array dims
        m_pad = m_needed
    n_pad = m_pad * R

    # ---- sanitize + pack indices: one fused XLA elementwise pass over the
    # (small, 1 or 4 byte/elem) index array.  Invalid / padded slots -> sentinel
    # -> all-zero output row. ----
    flat = jnp.where((flat >= 0) & (flat < C), flat, sentinel)
    if n_pad != n:
        flat = jnp.pad(flat, (0, n_pad - n), constant_values=sentinel)
    idx2d = flat.reshape(m_pad, R)
    if R > 1:
        # Fold the per-sub-row lane offset into the index so the kernel does a
        # single compare per column.  Valid values land in [0,127], sentinel
        # values in [-128,-C]: both fit int8 and negatives never match a lane.
        idx2d = idx2d + (jnp.arange(R, dtype=jnp.int32) * C)[None, :]
    idx2d = idx2d.astype(idx_dtype)

    packed = pl.pallas_call(
        _onehot_kernel,
        out_shape=jax.ShapeDtypeStruct((m_pad, PW), out_dtype),
        grid_spec=pltpu.PrefetchScalarGridSpec(
            num_scalar_prefetch=0,
            grid=(m_pad // tile_m,),
            in_specs=[pl.BlockSpec((tile_m, R), lambda i: (i, 0))],
            out_specs=pl.BlockSpec((tile_m, PW), lambda i: (i, 0)),
        ),
        compiler_params=pltpu.CompilerParams(
            # Row tiles are independent -> shard across v7x's 2 TensorCores.
            dimension_semantics=("parallel",),
            vmem_limit_bytes=32 * 1024 * 1024,
        ),
    )(idx2d)

    if PW != R * C:                        # general-C path: drop padded lanes
        packed = packed[:, :C]
    onehot = packed.reshape(m_pad * R, C)  # pure row-major reshape
    if m_pad * R != n:
        onehot = onehot[:n]
    return onehot.reshape(*orig_shape, C)


class IndicesToOneHot:
    """JAX/Pallas equivalent of torchoutil's IndicesToOneHot (default dtype=bool)."""

    def __init__(self, num_classes: int, dtype=jnp.bool_):
        self.num_classes = num_classes
        self.dtype = dtype

    def __call__(self, indices):
        return indices_to_onehot_pallas(indices, self.num_classes, dtype=self.dtype)


if __name__ == "__main__":
    key = jax.random.PRNGKey(0)

    # 1) packed path: C=16 -> 8 index rows per 128-lane output row, rows not a
    #    multiple of the pack factor (exercises sentinel padding).
    num_classes = 16
    shape = (4, 25)
    indices = jax.random.randint(key, shape, 0, num_classes, dtype=jnp.int32)
    onehot = jax.block_until_ready(IndicesToOneHot(num_classes)(indices))
    ref = indices[..., None] == jnp.arange(num_classes)[None, None, :]
    assert onehot.shape == (*shape, num_classes)
    assert onehot.dtype == jnp.bool_
    assert bool(jnp.all(onehot == ref))

    # 2) general-C path (10 does not divide 128): lane-padded output, sliced in wrapper.
    num_classes2 = 10
    idx2 = jax.random.randint(jax.random.PRNGKey(1), (8,), 0, num_classes2, dtype=jnp.int32)
    oh2 = jax.block_until_ready(IndicesToOneHot(num_classes2)(idx2))
    ref2 = idx2[:, None] == jnp.arange(num_classes2)[None, :]
    assert oh2.shape == (8, num_classes2) and oh2.dtype == jnp.bool_
    assert bool(jnp.all(oh2 == ref2))

    # 3) lane-aligned path (C % 128 == 0) with non-bool dtype emitted directly.
    num_classes3 = 128
    idx3 = jax.random.randint(jax.random.PRNGKey(2), (2, 8), 0, num_classes3, dtype=jnp.int32)
    oh3 = jax.block_until_ready(IndicesToOneHot(num_classes3, dtype=jnp.float32)(idx3))
    ref3 = (idx3[..., None] == jnp.arange(num_classes3)).astype(jnp.float32)
    assert oh3.shape == (2, 8, num_classes3) and oh3.dtype == jnp.float32
    assert bool(jnp.all(oh3 == ref3))

    # 4) tiny-C packed path (C=4 -> 32 rows per packed output row).
    num_classes4 = 4
    idx4 = jax.random.randint(jax.random.PRNGKey(3), (3, 7), 0, num_classes4, dtype=jnp.int32)
    oh4 = jax.block_until_ready(IndicesToOneHot(num_classes4)(idx4))
    ref4 = idx4[..., None] == jnp.arange(num_classes4)
    assert oh4.shape == (3, 7, num_classes4) and oh4.dtype == jnp.bool_
    assert bool(jnp.all(oh4 == ref4))

    print("KERNEL_OK")
</pallas_src>

<mosaic_0001>
module attributes {stable_mosaic.version = 11 : i64} {
  func.func @_onehot_kernel(%arg0: i32, %arg1: memref<13x8xi8, #tpu.memory_space<vmem>>, %arg2: memref<13x128xi32, #tpu.memory_space<vmem>>) attributes {dimension_semantics = [#tpu.dimension_semantics<parallel>], iteration_bounds = array<i64: 1>, scalar_prefetch = 0 : i64, scratch_operands = 0 : i64, tpu.core_type = #tpu.core_type<tc>, window_params = [{transform_indices = @transform_0, window_bounds = array<i64: 13, 8>}, {transform_indices = @transform_1, window_bounds = array<i64: 13, 128>}]} {
    %0 = tpu.iota {dimensions = array<i32: 1>} : vector<13x128xi32>
    %c0 = arith.constant 0 : index
    %c0_0 = arith.constant 0 : index
    %1 = vector.load %arg1[%c0, %c0_0] : memref<13x8xi8, #tpu.memory_space<vmem>>, vector<13x8xi8>
    %2 = arith.extsi %1 : vector<13x8xi8> to vector<13x8xi32>
    %3 = vector.extract_strided_slice %2 {offsets = [0, 0], sizes = [13, 1], strides = [1, 1]} : vector<13x8xi32> to vector<13x1xi32>
    %4 = vector.broadcast %3 : vector<13x1xi32> to vector<13x128xi32>
    %5 = arith.cmpi eq, %0, %4 : vector<13x128xi32>
    %6 = vector.extract_strided_slice %2 {offsets = [0, 1], sizes = [13, 1], strides = [1, 1]} : vector<13x8xi32> to vector<13x1xi32>
    %7 = vector.broadcast %6 : vector<13x1xi32> to vector<13x128xi32>
    %8 = arith.cmpi eq, %0, %7 : vector<13x128xi32>
    %9 = arith.ori %5, %8 : vector<13x128xi1>
    %10 = vector.extract_strided_slice %2 {offsets = [0, 2], sizes = [13, 1], strides = [1, 1]} : vector<13x8xi32> to vector<13x1xi32>
    %11 = vector.broadcast %10 : vector<13x1xi32> to vector<13x128xi32>
    %12 = arith.cmpi eq, %0, %11 : vector<13x128xi32>
    %13 = arith.ori %9, %12 : vector<13x128xi1>
    %14 = vector.extract_strided_slice %2 {offsets = [0, 3], sizes = [13, 1], strides = [1, 1]} : vector<13x8xi32> to vector<13x1xi32>
    %15 = vector.broadcast %14 : vector<13x1xi32> to vector<13x128xi32>
    %16 = arith.cmpi eq, %0, %15 : vector<13x128xi32>
    %17 = arith.ori %13, %16 : vector<13x128xi1>
    %18 = vector.extract_strided_slice %2 {offsets = [0, 4], sizes = [13, 1], strides = [1, 1]} : vector<13x8xi32> to vector<13x1xi32>
    %19 = vector.broadcast %18 : vector<13x1xi32> to vector<13x128xi32>
    %20 = arith.cmpi eq, %0, %19 : vector<13x128xi32>
    %21 = arith.ori %17, %20 : vector<13x128xi1>
    %22 = vector.extract_strided_slice %2 {offsets = [0, 5], sizes = [13, 1], strides = [1, 1]} : vector<13x8xi32> to vector<13x1xi32>
    %23 = vector.broadcast %22 : vector<13x1xi32> to vector<13x128xi32>
    %24 = arith.cmpi eq, %0, %23 : vector<13x128xi32>
    %25 = arith.ori %21, %24 : vector<13x128xi1>
    %26 = vector.extract_strided_slice %2 {offsets = [0, 6], sizes = [13, 1], strides = [1, 1]} : vector<13x8xi32> to vector<13x1xi32>
    %27 = vector.broadcast %26 : vector<13x1xi32> to vector<13x128xi32>
    %28 = arith.cmpi eq, %0, %27 : vector<13x128xi32>
    %29 = arith.ori %25, %28 : vector<13x128xi1>
    %30 = vector.extract_strided_slice %2 {offsets = [0, 7], sizes = [13, 1], strides = [1, 1]} : vector<13x8xi32> to vector<13x1xi32>
    %31 = vector.broadcast %30 : vector<13x1xi32> to vector<13x128xi32>
    %32 = arith.cmpi eq, %0, %31 : vector<13x128xi32>
    %33 = arith.ori %29, %32 : vector<13x128xi1>
    %c0_1 = arith.constant 0 : index
    %c0_2 = arith.constant 0 : index
    %34 = vector.load %arg2[%c0_1, %c0_2] : memref<13x128xi32, #tpu.memory_space<vmem>>, vector<13x128xi32>
    %35 = arith.extui %33 : vector<13x128xi1> to vector<13x128xi32>
    %cst = arith.constant dense<0> : vector<13x128xi32>
    %36 = arith.cmpi ne, %34, %cst : vector<13x128xi32>
    tpu.vector_store %arg2[%c0_1, %c0_2], %35 {strides = array<i32>} : memref<13x128xi32, #tpu.memory_space<vmem>>, vector<13x128xi32>,
    return
  }
  func.func @transform_0(%arg0: i32) -> (i32, i32) {
    %c0_i32 = arith.constant 0 : i32
    %c0_i32_0 = arith.constant 0 : i32
    return %arg0, %c0_i32 : i32, i32
  }
  func.func @transform_1(%arg0: i32) -> (i32, i32) {
    %c0_i32 = arith.constant 0 : i32
    %c0_i32_0 = arith.constant 0 : i32
    return %arg0, %c0_i32 : i32, i32
  }
}

</mosaic_0001>

<bundles_post_ra>
// kernel: tpu_custom_call.1
= control target key start
LH: loop header
LB: loop body
LE: loop exit
PB: predicated region body
PF: predicated region fallthrough
CT: control target
= control target key end

     0   :  { %v125_v0 = vmov 1   ;;  %v126_v1 = vmov 0   ;;  %v127_v5 = vmov 2   ;;  %v128_v6 = vmov 3   ;;  %s155_s0 = inlined_call_operand.vmem [shape: s8[13,8], index: 0, kind: input, shape index: {}]   ;;  %s156_s1 = inlined_call_operand.vmem [shape: s32[13,128], index: 1, kind: output, shape index: {}]  }
   0x1   :  { %113 = vset.pattern.permute.xlu1 %v125_v0  ;;  %112 = vset.pattern.permute.xlu0 %v126_v1  ;;  %v101_v2 = vld [vmem:[%s155_s0] sm:$0xf]   ;;  %v129_v7 = vmov 4   ;;  %v130_v8 = vmov 5   ;;  %v131_v9 = vmov 6   ;;  %v132_v10 = vmov 7  }
   0x2   :  { %v102_v3 = vunpack.c.0.s8 %v101_v2  ;;  %v103_v4 = vunpack.c.1.s8 %v101_v2  ;;  %v8_v17 = vlaneseq }
   0x4   :  { %23 = vperm.xlu1 %113, %v102_v3   ;;  %15 = vperm.xlu0 %112, %v102_v3   ;;  %v9_v20 = vand.u32 127, %v8_v17 }
   0x8   :  { %26 = vperm.xlu1 %113, %v103_v4   ;;  %18 = vperm.xlu0 %112, %v103_v4  }
   0xc   :  { %115 = vset.pattern.permute.xlu1 %v127_v5  ;;  %114 = vset.pattern.permute.xlu0 %v127_v5 }
   0xd   :  { %36 = vperm.xlu1 %115, %v103_v4   ;;  %33 = vperm.xlu0 %114, %v102_v3  }
  0x11   :  { %116 = vset.pattern.permute.xlu1 %v128_v6  ;;  %117 = vset.pattern.permute.xlu0 %v128_v6 }
  0x12   :  { %43 = vperm.xlu1 %116, %v102_v3   ;;  %46 = vperm.xlu0 %117, %v103_v4  }
  0x16   :  { %118 = vset.pattern.permute.xlu1 %v129_v7  ;;  %119 = vset.pattern.permute.xlu0 %v130_v8 }
  0x17   :  { %53 = vperm.xlu1 %118, %v102_v3   ;;  %63 = vperm.xlu0 %119, %v102_v3  }
  0x1b   :  { %56 = vperm.xlu1 %118, %v103_v4   ;;  %122 = vset.pattern.permute.xlu0 %v131_v9 }
  0x1c   :  { %76 = vperm.xlu0 %122, %v103_v4  }
  0x1f   :  { %120 = vset.pattern.permute.xlu1 %v130_v8 }
  0x20   :  { %66 = vperm.xlu1 %120, %v103_v4   ;;  %124 = vset.pattern.permute.xlu0 %v132_v10 }
  0x24   :  { %121 = vset.pattern.permute.xlu1 %v131_v9 }
  0x25   :  { %73 = vperm.xlu1 %121, %v102_v3  }
  0x29   :  { %123 = vset.pattern.permute.xlu1 %v132_v10 }
  0x2a   :  { %83 = vperm.xlu1 %123, %v102_v3  }
  0x2e   :  { %86 = vperm.xlu1 %123, %v103_v4  }
  0x83   :  { %v24_v11 = vpop.permute.xlu1 %23  ;;  %v16_v13 = vpop.permute.xlu0 %15 }
  0x84   :  { %vm28_vm0 = vcmp.eq.s32.totalorder %v9_v20, %v24_v11  ;;  %vm20_vm1 = vcmp.eq.s32.totalorder %v9_v20, %v16_v13 }
  0x85   :  { %vm30_vm5 = vmor %vm20_vm1, %vm28_vm0 }
  0x87   :  { %v27_v12 = vpop.permute.xlu1 %26  ;;  %v19_v15 = vpop.permute.xlu0 %18 }
  0x88   :  { %vm29_vm2 = vcmp.eq.s32.totalorder %v9_v20, %v27_v12  ;;  %vm21_vm3 = vcmp.eq.s32.totalorder %v9_v20, %v19_v15 }
  0x89   :  { %vm31_vm7 = vmor %vm21_vm3, %vm29_vm2 }
  0x8c   :  { %v37_v14 = vpop.permute.xlu1 %36  ;;  %v34_v19 = vpop.permute.xlu0 %33 }
  0x8d   :  { %vm38_vm4 = vcmp.eq.s32.totalorder %v9_v20, %v34_v19  ;;  %vm39_vm9 = vcmp.eq.s32.totalorder %v9_v20, %v37_v14 }
  0x8e   :  { %vm40_vm10 = vmor %vm30_vm5, %vm38_vm4 }
  0x8f   :  { %vm41_vm15 = vmor %vm31_vm7, %vm39_vm9 }
  0x91   :  { %v44_v16 = vpop.permute.xlu1 %43  ;;  %v47_v22 = vpop.permute.xlu0 %46 }
  0x92   :  { %vm48_vm6 = vcmp.eq.s32.totalorder %v9_v20, %v44_v16  ;;  %vm49_vm12 = vcmp.eq.s32.totalorder %v9_v20, %v47_v22 }
  0x93   :  { %vm50_vm11 = vmor %vm40_vm10, %vm48_vm6 }
  0x94   :  { %vm51_vm1 = vmor %vm41_vm15, %vm49_vm12 }
  0x96   :  { %v54_v18 = vpop.permute.xlu1 %53  ;;  %v64_v24 = vpop.permute.xlu0 %63 }
  0x97   :  { %vm58_vm8 = vcmp.eq.s32.totalorder %v9_v20, %v54_v18  ;;  %vm68_vm14 = vcmp.eq.s32.totalorder %v9_v20, %v64_v24 }
  0x98   :  { %vm60_vm13 = vmor %vm50_vm11, %vm58_vm8 }
  0x99   :  { %vm70_vm3 = vmor %vm60_vm13, %vm68_vm14 }
  0x9a   :  { %v57_v21 = vpop.permute.xlu1 %56 }
  0x9b   :  { %vm59_vm0 = vcmp.eq.s32.totalorder %v9_v20, %v57_v21  ;;  %v77_v26 = vpop.permute.xlu0 %76 }
  0x9c   :  { %vm61_vm5 = vmor %vm51_vm1, %vm59_vm0  ;;  %vm79_vm11 = vcmp.eq.s32.totalorder %v9_v20, %v77_v26 }
  0x9f   :  { %v67_v23 = vpop.permute.xlu1 %66 }
  0xa0   :  { %vm69_vm2 = vcmp.eq.s32.totalorder %v9_v20, %v67_v23 }
  0xa1   :  { %vm71_vm6 = vmor %vm61_vm5, %vm69_vm2 }
  0xa2   :  { %vm81_vm9 = vmor %vm71_vm6, %vm79_vm11 }
  0xa4   :  { %v74_v25 = vpop.permute.xlu1 %73 }
  0xa5   :  { %vm78_vm4 = vcmp.eq.s32.totalorder %v9_v20, %v74_v25 }
  0xa6   :  { %vm80_vm10 = vmor %vm70_vm3, %vm78_vm4 }
  0xa9   :  { %v84_v27 = vpop.permute.xlu1 %83 }
  0xaa   :  { %vm88_vm8 = vcmp.eq.s32.totalorder %v9_v20, %v84_v27 }
  0xab   :  { %vm90_vm7 = vmor %vm80_vm10, %vm88_vm8 }
  0xac   :  { %v92_v28 = vsel %vm90_vm7, 1, %v126_v1 }
  0xad   :  { %94 = vst [vmem:[%s156_s1] sm:$0xff] %v92_v28  ;;  %v87_v29 = vpop.permute.xlu1 %86 }
  0xae   :  { %vm89_vm12 = vcmp.eq.s32.totalorder %v9_v20, %v87_v29 }
  0xaf   :  { %vm91_vm15 = vmor %vm81_vm9, %vm89_vm12 }
  0xb0   :  { %v93_v30 = vsel %vm91_vm15, 1, %v126_v1 }
  0xb1   :  { %95 = vst [vmem:[%s156_s1 + $0x8] sm:$0x1f] %v93_v30 }

</bundles_post_ra>
